<compile_context>
chip_gen: v7x
topology: tpu7x:2x2x1
jax: 0.10.0
libtpu: 0.0.40
codegen_flags: <defaults>
</compile_context>

<pallas_src>
import functools

import numpy as np
import jax
import jax.numpy as jnp
from jax import lax
from jax.experimental import pallas as pl
from jax.experimental.pallas import tpu as pltpu

_LANE = 128
_SUBLANE = 8
_NEG = -1e30  # finite "-inf": masked entries can never produce inf/NaN


def _round_up(x, m):
    return ((x + m - 1) // m) * m


def _ordinal_regression_kernel(zx_ref, zyT_ref, theta_ref, beta_ref, out_ref,
                               s_ref, cmax_ref, csum_ref,
                               *, n_rows, n_cols, emb_dim, tn, n_pad, m_pad):
    n = pl.program_id(0)
    num_n = pl.num_programs(0)
    rows = pl.ds(n * tn, tn)

    # ---- init online column-softmax stats once -------------------------------
    @pl.when(n == 0)
    def _init_col_stats():
        cmax_ref[...] = jnp.full((1, m_pad), _NEG, jnp.float32)
        csum_ref[...] = jnp.zeros((1, m_pad), jnp.float32)

    # ---- s tile = -sum_d |zx - zy| : per-d VPU accumulation, lane-dense in M.
    # Static python loop keeps every ref slice static (no dynamic lane indexing)
    # and avoids any (tn, m_pad, D) temporary.
    part = jnp.zeros((tn, m_pad), jnp.float32)
    for d in range(emb_dim):
        xcol = zx_ref[:, d:d + 1]          # (tn, 1)   lane-broadcast
        yrow = zyT_ref[d:d + 1, :]         # (1, m_pad) sublane-broadcast
        part = part - jnp.abs(xcol - yrow)

    # mask padded rows / columns so they cannot influence either softmax
    gr = lax.broadcasted_iota(jnp.int32, (tn, m_pad), 0) + n * tn
    gc = lax.broadcasted_iota(jnp.int32, (tn, m_pad), 1)
    s_tile = jnp.where((gr < n_rows) & (gc < n_cols), part, _NEG)
    s_ref[rows, :] = s_tile

    # ---- online column-softmax statistics (axis=0), rescale-on-new-max -------
    tile_max = jnp.max(s_tile, axis=0, keepdims=True)            # (1, m_pad)
    new_max = jnp.maximum(cmax_ref[...], tile_max)
    csum_ref[...] = (csum_ref[...] * jnp.exp(cmax_ref[...] - new_max)
                     + jnp.sum(jnp.exp(s_tile - new_max), axis=0, keepdims=True))
    cmax_ref[...] = new_max

    # ---- epilogue: both softmaxes, SSA combine, fused normalization, head ----
    @pl.when(n == num_n - 1)
    def _epilogue():
        s = s_ref[...]                                           # (n_pad, m_pad)
        # row softmax (axis=1): lane reduction per row
        rmax = jnp.max(s, axis=1, keepdims=True)
        e1 = jnp.exp(s - rmax)
        a = e1 * (1.0 / jnp.sum(e1, axis=1, keepdims=True))
        # column softmax from the online statistics
        b = jnp.exp(s - cmax_ref[...]) * (1.0 / csum_ref[...])
        gr2 = lax.broadcasted_iota(jnp.int32, (n_pad, m_pad), 0)
        gc2 = lax.broadcasted_iota(jnp.int32, (n_pad, m_pad), 1)
        valid = (gr2 < n_rows) & (gc2 < n_cols)
        w = jnp.where(valid, a + b - a * b, 0.0)
        # fused normalization: a/sum(a) then sum(a*s)  ==  sum(w*s)/sum(w)
        c = jnp.sum(w * s) / jnp.sum(w)
        out_ref[...] = c * theta_ref[...] + beta_ref[...]        # lane-dense (1,128)


def ordinal_regression_forward(z_x, z_y, theta, beta, *, tn=64):
    """z_x: (N, D), z_y: (M, D), theta: (1, K-1), beta: (K-1,) -> logits (K-1,)."""
    z_x = jnp.asarray(z_x, jnp.float32)
    z_y = jnp.asarray(z_y, jnp.float32)
    N, D = z_x.shape
    M, D2 = z_y.shape
    assert D == D2, "embedding dims of z_x and z_y must match"
    theta2d = jnp.asarray(theta, jnp.float32).reshape(1, -1)
    beta2d = jnp.asarray(beta, jnp.float32).reshape(1, -1)
    K1 = theta2d.shape[1]
    assert K1 <= _LANE, "n_classes-1 must fit one lane row"

    TN = min(_round_up(max(tn, _SUBLANE), _SUBLANE), _round_up(N, _SUBLANE))
    N_PAD = _round_up(N, TN)
    M_PAD = _round_up(M, _LANE)

    # VMEM budget sanity (size for v7x's 64 MiB, not v5e/v6e's 128 MiB).
    resident_bytes = (N_PAD * M_PAD + D * M_PAD + 2 * TN * D + 2 * M_PAD + 3 * _LANE) * 4
    assert resident_bytes <= 40 * (1 << 20), (
        "resident score matrix too large for v7x VMEM; tile M (two-pass) for these sizes")
    vmem_limit = int(min(64 << 20, max(16 << 20, 2 * resident_bytes)))

    # Pad & transpose so M is lane-dense; padded z_y columns are zero and masked
    # out inside the kernel.
    zx_p = jnp.pad(z_x, ((0, N_PAD - N), (0, 0)))                # (N_PAD, D)
    zyT_p = jnp.pad(z_y.T, ((0, 0), (0, M_PAD - M)))             # (D, M_PAD)
    theta_p = jnp.pad(theta2d, ((0, 0), (0, _LANE - K1)))        # (1, 128)
    beta_p = jnp.pad(beta2d, ((0, 0), (0, _LANE - K1)))          # (1, 128)

    kernel = functools.partial(
        _ordinal_regression_kernel,
        n_rows=N, n_cols=M, emb_dim=D, tn=TN, n_pad=N_PAD, m_pad=M_PAD)

    out = pl.pallas_call(
        kernel,
        out_shape=jax.ShapeDtypeStruct((1, _LANE), jnp.float32),
        grid_spec=pltpu.PrefetchScalarGridSpec(
            num_scalar_prefetch=0,
            grid=(N_PAD // TN,),
            in_specs=[
                pl.BlockSpec((TN, D), lambda n: (n, 0)),          # streamed z_x rows
                pl.BlockSpec((D, M_PAD), lambda n: (0, 0)),       # resident z_y^T
                pl.BlockSpec((1, _LANE), lambda n: (0, 0)),       # theta (padded)
                pl.BlockSpec((1, _LANE), lambda n: (0, 0)),       # beta  (padded)
            ],
            out_specs=pl.BlockSpec((1, _LANE), lambda n: (0, 0)),
            scratch_shapes=[
                pltpu.VMEM((N_PAD, M_PAD), jnp.float32),          # resident scores s
                pltpu.VMEM((1, M_PAD), jnp.float32),              # online col max
                pltpu.VMEM((1, M_PAD), jnp.float32),              # online col exp-sum
            ],
        ),
        compiler_params=pltpu.CompilerParams(
            dimension_semantics=("arbitrary",),                   # carries col stats/output
            vmem_limit_bytes=vmem_limit,
        ),
    )(zx_p, zyT_p, theta_p, beta_p)
    return out[0, :K1]


def _reference_forward(z_x, z_y, theta, beta):
    s = -jnp.sum(jnp.abs(z_x[:, None, :] - z_y[None, :, :]), axis=-1)
    a = jax.nn.softmax(s, axis=1)
    b = jax.nn.softmax(s, axis=0)
    a = a + b - a * b
    a = a / jnp.sum(a)
    c = jnp.sum(a * s)
    return (c * theta + beta.reshape(1, -1)).reshape(-1)


def init_params(embed_dim, n_classes):
    # Mirrors OrdinalRegression.__init__ with compare=L1(), gap_init=-10.
    ex = 2.0 * np.sqrt(2.0 / np.pi) * embed_dim
    var = 4.0 * (1.0 - 2.0 / np.pi) * embed_dim
    beta_init = ex / np.sqrt(var)
    theta = jnp.ones((1, n_classes - 1), jnp.float32) / np.sqrt(var)
    theta = jnp.maximum(theta, 0.0)               # self.clip() (no removed a_min kwarg)
    beta = jnp.zeros((n_classes - 1,), jnp.float32) + beta_init
    gap = jnp.array([-10.0], jnp.float32)         # unused (allow_insertions=False)
    return theta, beta, gap


if __name__ == "__main__":
    embed_dim = 32
    n_classes = 5
    N, M = 12, 40    # deliberately unaligned -> exercises row/col padding + masking

    key = jax.random.PRNGKey(0)
    kx, ky = jax.random.split(key)
    z_x = jax.random.normal(kx, (N, embed_dim), dtype=jnp.float32)
    z_y = jax.random.normal(ky, (M, embed_dim), dtype=jnp.float32)

    theta, beta, _gap = init_params(embed_dim, n_classes)

    # tn=8 forces two row tiles so the online column-softmax combine is exercised.
    logits = ordinal_regression_forward(z_x, z_y, theta, beta, tn=8)
    logits = jax.block_until_ready(logits)

    ref = _reference_forward(z_x, z_y, theta, beta)
    assert logits.shape == (n_classes - 1,), logits.shape
    assert jnp.allclose(logits, ref, atol=5e-4, rtol=5e-4), (logits, ref)

    print("KERNEL_OK")
</pallas_src>

<mosaic_0001>
module attributes {stable_mosaic.version = 11 : i64} {
  func.func @_ordinal_regression_kernel(%arg0: i32, %arg1: memref<8x32xf32, #tpu.memory_space<vmem>>, %arg2: memref<32x128xf32, #tpu.memory_space<vmem>>, %arg3: memref<1x128xf32, #tpu.memory_space<vmem>>, %arg4: memref<1x128xf32, #tpu.memory_space<vmem>>, %arg5: memref<1x128xf32, #tpu.memory_space<vmem>>, %arg6: memref<16x128xf32, #tpu.memory_space<vmem>>, %arg7: memref<1x128xf32, #tpu.memory_space<vmem>>, %arg8: memref<1x128xf32, #tpu.memory_space<vmem>>) attributes {dimension_semantics = [#tpu.dimension_semantics<arbitrary>], iteration_bounds = array<i64: 2>, scalar_prefetch = 0 : i64, scratch_operands = 3 : i64, tpu.core_type = #tpu.core_type<tc>, window_params = [{transform_indices = @transform_0, window_bounds = array<i64: 8, 32>}, {pipeline_mode = #tpu.pipeline_mode<synchronous>, transform_indices = @transform_1, window_bounds = array<i64: 32, 128>}, {pipeline_mode = #tpu.pipeline_mode<synchronous>, transform_indices = @transform_2, window_bounds = array<i64: 1, 128>}, {pipeline_mode = #tpu.pipeline_mode<synchronous>, transform_indices = @transform_3, window_bounds = array<i64: 1, 128>}, {pipeline_mode = #tpu.pipeline_mode<synchronous>, transform_indices = @transform_4, window_bounds = array<i64: 1, 128>}]} {
    %c8_i32 = arith.constant 8 : i32
    %0 = arith.muli %arg0, %c8_i32 : i32
    %c0_i32 = arith.constant 0 : i32
    %1 = arith.cmpi eq, %arg0, %c0_i32 : i32
    %2 = arith.extui %1 : i1 to i32
    %c0_i32_0 = arith.constant 0 : i32
    %3 = arith.cmpi ne, %2, %c0_i32_0 : i32
    scf.if %3 {
      %cst_113 = arith.constant -1.000000e+30 : f32
      %263 = vector.broadcast %cst_113 : f32 to vector<1x128xf32>
      %c0_114 = arith.constant 0 : index
      %c0_115 = arith.constant 0 : index
      %264 = vector.load %arg7[%c0_114, %c0_115] : memref<1x128xf32, #tpu.memory_space<vmem>>, vector<1x128xf32>
      tpu.vector_store %arg7[%c0_114, %c0_115], %263 {strides = array<i32>} : memref<1x128xf32, #tpu.memory_space<vmem>>, vector<1x128xf32>,
      %cst_116 = arith.constant 0.000000e+00 : f32
      %265 = vector.broadcast %cst_116 : f32 to vector<1x128xf32>
      %c0_117 = arith.constant 0 : index
      %c0_118 = arith.constant 0 : index
      %266 = vector.load %arg8[%c0_117, %c0_118] : memref<1x128xf32, #tpu.memory_space<vmem>>, vector<1x128xf32>
      tpu.vector_store %arg8[%c0_117, %c0_118], %265 {strides = array<i32>} : memref<1x128xf32, #tpu.memory_space<vmem>>, vector<1x128xf32>,
    } else {
    }
    %cst = arith.constant 0.000000e+00 : f32
    %4 = vector.broadcast %cst : f32 to vector<8x128xf32>
    %c0 = arith.constant 0 : index
    %c0_1 = arith.constant 0 : index
    %5 = vector.load %arg1[%c0, %c0_1] : memref<8x32xf32, #tpu.memory_space<vmem>>, vector<8x1xf32>
    %c0_2 = arith.constant 0 : index
    %c0_3 = arith.constant 0 : index
    %6 = vector.load %arg2[%c0_2, %c0_3] : memref<32x128xf32, #tpu.memory_space<vmem>>, vector<1x128xf32>
    %7 = vector.broadcast %5 : vector<8x1xf32> to vector<8x128xf32>
    %8 = vector.broadcast %6 : vector<1x128xf32> to vector<8x128xf32>
    %9 = arith.subf %7, %8 : vector<8x128xf32>
    %10 = math.absf %9 : vector<8x128xf32>
    %11 = arith.subf %4, %10 : vector<8x128xf32>
    %c0_4 = arith.constant 0 : index
    %c1 = arith.constant 1 : index
    %12 = vector.load %arg1[%c0_4, %c1] : memref<8x32xf32, #tpu.memory_space<vmem>>, vector<8x1xf32>
    %c1_5 = arith.constant 1 : index
    %c0_6 = arith.constant 0 : index
    %13 = vector.load %arg2[%c1_5, %c0_6] : memref<32x128xf32, #tpu.memory_space<vmem>>, vector<1x128xf32>
    %14 = vector.broadcast %12 : vector<8x1xf32> to vector<8x128xf32>
    %15 = vector.broadcast %13 : vector<1x128xf32> to vector<8x128xf32>
    %16 = arith.subf %14, %15 : vector<8x128xf32>
    %17 = math.absf %16 : vector<8x128xf32>
    %18 = arith.subf %11, %17 : vector<8x128xf32>
    %c0_7 = arith.constant 0 : index
    %c2 = arith.constant 2 : index
    %19 = vector.load %arg1[%c0_7, %c2] : memref<8x32xf32, #tpu.memory_space<vmem>>, vector<8x1xf32>
    %c2_8 = arith.constant 2 : index
    %c0_9 = arith.constant 0 : index
    %20 = vector.load %arg2[%c2_8, %c0_9] : memref<32x128xf32, #tpu.memory_space<vmem>>, vector<1x128xf32>
    %21 = vector.broadcast %19 : vector<8x1xf32> to vector<8x128xf32>
    %22 = vector.broadcast %20 : vector<1x128xf32> to vector<8x128xf32>
    %23 = arith.subf %21, %22 : vector<8x128xf32>
    %24 = math.absf %23 : vector<8x128xf32>
    %25 = arith.subf %18, %24 : vector<8x128xf32>
    %c0_10 = arith.constant 0 : index
    %c3 = arith.constant 3 : index
    %26 = vector.load %arg1[%c0_10, %c3] : memref<8x32xf32, #tpu.memory_space<vmem>>, vector<8x1xf32>
    %c3_11 = arith.constant 3 : index
    %c0_12 = arith.constant 0 : index
    %27 = vector.load %arg2[%c3_11, %c0_12] : memref<32x128xf32, #tpu.memory_space<vmem>>, vector<1x128xf32>
    %28 = vector.broadcast %26 : vector<8x1xf32> to vector<8x128xf32>
    %29 = vector.broadcast %27 : vector<1x128xf32> to vector<8x128xf32>
    %30 = arith.subf %28, %29 : vector<8x128xf32>
    %31 = math.absf %30 : vector<8x128xf32>
    %32 = arith.subf %25, %31 : vector<8x128xf32>
    %c0_13 = arith.constant 0 : index
    %c4 = arith.constant 4 : index
    %33 = vector.load %arg1[%c0_13, %c4] : memref<8x32xf32, #tpu.memory_space<vmem>>, vector<8x1xf32>
    %c4_14 = arith.constant 4 : index
    %c0_15 = arith.constant 0 : index
    %34 = vector.load %arg2[%c4_14, %c0_15] : memref<32x128xf32, #tpu.memory_space<vmem>>, vector<1x128xf32>
    %35 = vector.broadcast %33 : vector<8x1xf32> to vector<8x128xf32>
    %36 = vector.broadcast %34 : vector<1x128xf32> to vector<8x128xf32>
    %37 = arith.subf %35, %36 : vector<8x128xf32>
    %38 = math.absf %37 : vector<8x128xf32>
    %39 = arith.subf %32, %38 : vector<8x128xf32>
    %c0_16 = arith.constant 0 : index
    %c5 = arith.constant 5 : index
    %40 = vector.load %arg1[%c0_16, %c5] : memref<8x32xf32, #tpu.memory_space<vmem>>, vector<8x1xf32>
    %c5_17 = arith.constant 5 : index
    %c0_18 = arith.constant 0 : index
    %41 = vector.load %arg2[%c5_17, %c0_18] : memref<32x128xf32, #tpu.memory_space<vmem>>, vector<1x128xf32>
    %42 = vector.broadcast %40 : vector<8x1xf32> to vector<8x128xf32>
    %43 = vector.broadcast %41 : vector<1x128xf32> to vector<8x128xf32>
    %44 = arith.subf %42, %43 : vector<8x128xf32>
    %45 = math.absf %44 : vector<8x128xf32>
    %46 = arith.subf %39, %45 : vector<8x128xf32>
    %c0_19 = arith.constant 0 : index
    %c6 = arith.constant 6 : index
    %47 = vector.load %arg1[%c0_19, %c6] : memref<8x32xf32, #tpu.memory_space<vmem>>, vector<8x1xf32>
    %c6_20 = arith.constant 6 : index
    %c0_21 = arith.constant 0 : index
    %48 = vector.load %arg2[%c6_20, %c0_21] : memref<32x128xf32, #tpu.memory_space<vmem>>, vector<1x128xf32>
    %49 = vector.broadcast %47 : vector<8x1xf32> to vector<8x128xf32>
    %50 = vector.broadcast %48 : vector<1x128xf32> to vector<8x128xf32>
    %51 = arith.subf %49, %50 : vector<8x128xf32>
    %52 = math.absf %51 : vector<8x128xf32>
    %53 = arith.subf %46, %52 : vector<8x128xf32>
    %c0_22 = arith.constant 0 : index
    %c7 = arith.constant 7 : index
    %54 = vector.load %arg1[%c0_22, %c7] : memref<8x32xf32, #tpu.memory_space<vmem>>, vector<8x1xf32>
    %c7_23 = arith.constant 7 : index
    %c0_24 = arith.constant 0 : index
    %55 = vector.load %arg2[%c7_23, %c0_24] : memref<32x128xf32, #tpu.memory_space<vmem>>, vector<1x128xf32>
    %56 = vector.broadcast %54 : vector<8x1xf32> to vector<8x128xf32>
    %57 = vector.broadcast %55 : vector<1x128xf32> to vector<8x128xf32>
    %58 = arith.subf %56, %57 : vector<8x128xf32>
    %59 = math.absf %58 : vector<8x128xf32>
    %60 = arith.subf %53, %59 : vector<8x128xf32>
    %c0_25 = arith.constant 0 : index
    %c8 = arith.constant 8 : index
    %61 = vector.load %arg1[%c0_25, %c8] : memref<8x32xf32, #tpu.memory_space<vmem>>, vector<8x1xf32>
    %c8_26 = arith.constant 8 : index
    %c0_27 = arith.constant 0 : index
    %62 = vector.load %arg2[%c8_26, %c0_27] : memref<32x128xf32, #tpu.memory_space<vmem>>, vector<1x128xf32>
    %63 = vector.broadcast %61 : vector<8x1xf32> to vector<8x128xf32>
    %64 = vector.broadcast %62 : vector<1x128xf32> to vector<8x128xf32>
    %65 = arith.subf %63, %64 : vector<8x128xf32>
    %66 = math.absf %65 : vector<8x128xf32>
    %67 = arith.subf %60, %66 : vector<8x128xf32>
    %c0_28 = arith.constant 0 : index
    %c9 = arith.constant 9 : index
    %68 = vector.load %arg1[%c0_28, %c9] : memref<8x32xf32, #tpu.memory_space<vmem>>, vector<8x1xf32>
    %c9_29 = arith.constant 9 : index
    %c0_30 = arith.constant 0 : index
    %69 = vector.load %arg2[%c9_29, %c0_30] : memref<32x128xf32, #tpu.memory_space<vmem>>, vector<1x128xf32>
    %70 = vector.broadcast %68 : vector<8x1xf32> to vector<8x128xf32>
    %71 = vector.broadcast %69 : vector<1x128xf32> to vector<8x128xf32>
    %72 = arith.subf %70, %71 : vector<8x128xf32>
    %73 = math.absf %72 : vector<8x128xf32>
    %74 = arith.subf %67, %73 : vector<8x128xf32>
    %c0_31 = arith.constant 0 : index
    %c10 = arith.constant 10 : index
    %75 = vector.load %arg1[%c0_31, %c10] : memref<8x32xf32, #tpu.memory_space<vmem>>, vector<8x1xf32>
    %c10_32 = arith.constant 10 : index
    %c0_33 = arith.constant 0 : index
    %76 = vector.load %arg2[%c10_32, %c0_33] : memref<32x128xf32, #tpu.memory_space<vmem>>, vector<1x128xf32>
    %77 = vector.broadcast %75 : vector<8x1xf32> to vector<8x128xf32>
    %78 = vector.broadcast %76 : vector<1x128xf32> to vector<8x128xf32>
    %79 = arith.subf %77, %78 : vector<8x128xf32>
    %80 = math.absf %79 : vector<8x128xf32>
    %81 = arith.subf %74, %80 : vector<8x128xf32>
    %c0_34 = arith.constant 0 : index
    %c11 = arith.constant 11 : index
    %82 = vector.load %arg1[%c0_34, %c11] : memref<8x32xf32, #tpu.memory_space<vmem>>, vector<8x1xf32>
    %c11_35 = arith.constant 11 : index
    %c0_36 = arith.constant 0 : index
    %83 = vector.load %arg2[%c11_35, %c0_36] : memref<32x128xf32, #tpu.memory_space<vmem>>, vector<1x128xf32>
    %84 = vector.broadcast %82 : vector<8x1xf32> to vector<8x128xf32>
    %85 = vector.broadcast %83 : vector<1x128xf32> to vector<8x128xf32>
    %86 = arith.subf %84, %85 : vector<8x128xf32>
    %87 = math.absf %86 : vector<8x128xf32>
    %88 = arith.subf %81, %87 : vector<8x128xf32>
    %c0_37 = arith.constant 0 : index
    %c12 = arith.constant 12 : index
    %89 = vector.load %arg1[%c0_37, %c12] : memref<8x32xf32, #tpu.memory_space<vmem>>, vector<8x1xf32>
    %c12_38 = arith.constant 12 : index
    %c0_39 = arith.constant 0 : index
    %90 = vector.load %arg2[%c12_38, %c0_39] : memref<32x128xf32, #tpu.memory_space<vmem>>, vector<1x128xf32>
    %91 = vector.broadcast %89 : vector<8x1xf32> to vector<8x128xf32>
    %92 = vector.broadcast %90 : vector<1x128xf32> to vector<8x128xf32>
    %93 = arith.subf %91, %92 : vector<8x128xf32>
    %94 = math.absf %93 : vector<8x128xf32>
    %95 = arith.subf %88, %94 : vector<8x128xf32>
    %c0_40 = arith.constant 0 : index
    %c13 = arith.constant 13 : index
    %96 = vector.load %arg1[%c0_40, %c13] : memref<8x32xf32, #tpu.memory_space<vmem>>, vector<8x1xf32>
    %c13_41 = arith.constant 13 : index
    %c0_42 = arith.constant 0 : index
    %97 = vector.load %arg2[%c13_41, %c0_42] : memref<32x128xf32, #tpu.memory_space<vmem>>, vector<1x128xf32>
    %98 = vector.broadcast %96 : vector<8x1xf32> to vector<8x128xf32>
    %99 = vector.broadcast %97 : vector<1x128xf32> to vector<8x128xf32>
    %100 = arith.subf %98, %99 : vector<8x128xf32>
    %101 = math.absf %100 : vector<8x128xf32>
    %102 = arith.subf %95, %101 : vector<8x128xf32>
    %c0_43 = arith.constant 0 : index
    %c14 = arith.constant 14 : index
    %103 = vector.load %arg1[%c0_43, %c14] : memref<8x32xf32, #tpu.memory_space<vmem>>, vector<8x1xf32>
    %c14_44 = arith.constant 14 : index
    %c0_45 = arith.constant 0 : index
    %104 = vector.load %arg2[%c14_44, %c0_45] : memref<32x128xf32, #tpu.memory_space<vmem>>, vector<1x128xf32>
    %105 = vector.broadcast %103 : vector<8x1xf32> to vector<8x128xf32>
    %106 = vector.broadcast %104 : vector<1x128xf32> to vector<8x128xf32>
    %107 = arith.subf %105, %106 : vector<8x128xf32>
    %108 = math.absf %107 : vector<8x128xf32>
    %109 = arith.subf %102, %108 : vector<8x128xf32>
    %c0_46 = arith.constant 0 : index
    %c15 = arith.constant 15 : index
    %110 = vector.load %arg1[%c0_46, %c15] : memref<8x32xf32, #tpu.memory_space<vmem>>, vector<8x1xf32>
    %c15_47 = arith.constant 15 : index
    %c0_48 = arith.constant 0 : index
    %111 = vector.load %arg2[%c15_47, %c0_48] : memref<32x128xf32, #tpu.memory_space<vmem>>, vector<1x128xf32>
    %112 = vector.broadcast %110 : vector<8x1xf32> to vector<8x128xf32>
    %113 = vector.broadcast %111 : vector<1x128xf32> to vector<8x128xf32>
    %114 = arith.subf %112, %113 : vector<8x128xf32>
    %115 = math.absf %114 : vector<8x128xf32>
    %116 = arith.subf %109, %115 : vector<8x128xf32>
    %c0_49 = arith.constant 0 : index
    %c16 = arith.constant 16 : index
    %117 = vector.load %arg1[%c0_49, %c16] : memref<8x32xf32, #tpu.memory_space<vmem>>, vector<8x1xf32>
    %c16_50 = arith.constant 16 : index
    %c0_51 = arith.constant 0 : index
    %118 = vector.load %arg2[%c16_50, %c0_51] : memref<32x128xf32, #tpu.memory_space<vmem>>, vector<1x128xf32>
    %119 = vector.broadcast %117 : vector<8x1xf32> to vector<8x128xf32>
    %120 = vector.broadcast %118 : vector<1x128xf32> to vector<8x128xf32>
    %121 = arith.subf %119, %120 : vector<8x128xf32>
    %122 = math.absf %121 : vector<8x128xf32>
    %123 = arith.subf %116, %122 : vector<8x128xf32>
    %c0_52 = arith.constant 0 : index
    %c17 = arith.constant 17 : index
    %124 = vector.load %arg1[%c0_52, %c17] : memref<8x32xf32, #tpu.memory_space<vmem>>, vector<8x1xf32>
    %c17_53 = arith.constant 17 : index
    %c0_54 = arith.constant 0 : index
    %125 = vector.load %arg2[%c17_53, %c0_54] : memref<32x128xf32, #tpu.memory_space<vmem>>, vector<1x128xf32>
    %126 = vector.broadcast %124 : vector<8x1xf32> to vector<8x128xf32>
    %127 = vector.broadcast %125 : vector<1x128xf32> to vector<8x128xf32>
    %128 = arith.subf %126, %127 : vector<8x128xf32>
    %129 = math.absf %128 : vector<8x128xf32>
    %130 = arith.subf %123, %129 : vector<8x128xf32>
    %c0_55 = arith.constant 0 : index
    %c18 = arith.constant 18 : index
    %131 = vector.load %arg1[%c0_55, %c18] : memref<8x32xf32, #tpu.memory_space<vmem>>, vector<8x1xf32>
    %c18_56 = arith.constant 18 : index
    %c0_57 = arith.constant 0 : index
    %132 = vector.load %arg2[%c18_56, %c0_57] : memref<32x128xf32, #tpu.memory_space<vmem>>, vector<1x128xf32>
    %133 = vector.broadcast %131 : vector<8x1xf32> to vector<8x128xf32>
    %134 = vector.broadcast %132 : vector<1x128xf32> to vector<8x128xf32>
    %135 = arith.subf %133, %134 : vector<8x128xf32>
    %136 = math.absf %135 : vector<8x128xf32>
    %137 = arith.subf %130, %136 : vector<8x128xf32>
    %c0_58 = arith.constant 0 : index
    %c19 = arith.constant 19 : index
    %138 = vector.load %arg1[%c0_58, %c19] : memref<8x32xf32, #tpu.memory_space<vmem>>, vector<8x1xf32>
    %c19_59 = arith.constant 19 : index
    %c0_60 = arith.constant 0 : index
    %139 = vector.load %arg2[%c19_59, %c0_60] : memref<32x128xf32, #tpu.memory_space<vmem>>, vector<1x128xf32>
    %140 = vector.broadcast %138 : vector<8x1xf32> to vector<8x128xf32>
    %141 = vector.broadcast %139 : vector<1x128xf32> to vector<8x128xf32>
    %142 = arith.subf %140, %141 : vector<8x128xf32>
    %143 = math.absf %142 : vector<8x128xf32>
    %144 = arith.subf %137, %143 : vector<8x128xf32>
    %c0_61 = arith.constant 0 : index
    %c20 = arith.constant 20 : index
    %145 = vector.load %arg1[%c0_61, %c20] : memref<8x32xf32, #tpu.memory_space<vmem>>, vector<8x1xf32>
    %c20_62 = arith.constant 20 : index
    %c0_63 = arith.constant 0 : index
    %146 = vector.load %arg2[%c20_62, %c0_63] : memref<32x128xf32, #tpu.memory_space<vmem>>, vector<1x128xf32>
    %147 = vector.broadcast %145 : vector<8x1xf32> to vector<8x128xf32>
    %148 = vector.broadcast %146 : vector<1x128xf32> to vector<8x128xf32>
    %149 = arith.subf %147, %148 : vector<8x128xf32>
    %150 = math.absf %149 : vector<8x128xf32>
    %151 = arith.subf %144, %150 : vector<8x128xf32>
    %c0_64 = arith.constant 0 : index
    %c21 = arith.constant 21 : index
    %152 = vector.load %arg1[%c0_64, %c21] : memref<8x32xf32, #tpu.memory_space<vmem>>, vector<8x1xf32>
    %c21_65 = arith.constant 21 : index
    %c0_66 = arith.constant 0 : index
    %153 = vector.load %arg2[%c21_65, %c0_66] : memref<32x128xf32, #tpu.memory_space<vmem>>, vector<1x128xf32>
    %154 = vector.broadcast %152 : vector<8x1xf32> to vector<8x128xf32>
    %155 = vector.broadcast %153 : vector<1x128xf32> to vector<8x128xf32>
    %156 = arith.subf %154, %155 : vector<8x128xf32>
    %157 = math.absf %156 : vector<8x128xf32>
    %158 = arith.subf %151, %157 : vector<8x128xf32>
    %c0_67 = arith.constant 0 : index
    %c22 = arith.constant 22 : index
    %159 = vector.load %arg1[%c0_67, %c22] : memref<8x32xf32, #tpu.memory_space<vmem>>, vector<8x1xf32>
    %c22_68 = arith.constant 22 : index
    %c0_69 = arith.constant 0 : index
    %160 = vector.load %arg2[%c22_68, %c0_69] : memref<32x128xf32, #tpu.memory_space<vmem>>, vector<1x128xf32>
    %161 = vector.broadcast %159 : vector<8x1xf32> to vector<8x128xf32>
    %162 = vector.broadcast %160 : vector<1x128xf32> to vector<8x128xf32>
    %163 = arith.subf %161, %162 : vector<8x128xf32>
    %164 = math.absf %163 : vector<8x128xf32>
    %165 = arith.subf %158, %164 : vector<8x128xf32>
    %c0_70 = arith.constant 0 : index
    %c23 = arith.constant 23 : index
    %166 = vector.load %arg1[%c0_70, %c23] : memref<8x32xf32, #tpu.memory_space<vmem>>, vector<8x1xf32>
    %c23_71 = arith.constant 23 : index
    %c0_72 = arith.constant 0 : index
    %167 = vector.load %arg2[%c23_71, %c0_72] : memref<32x128xf32, #tpu.memory_space<vmem>>, vector<1x128xf32>
    %168 = vector.broadcast %166 : vector<8x1xf32> to vector<8x128xf32>
    %169 = vector.broadcast %167 : vector<1x128xf32> to vector<8x128xf32>
    %170 = arith.subf %168, %169 : vector<8x128xf32>
    %171 = math.absf %170 : vector<8x128xf32>
    %172 = arith.subf %165, %171 : vector<8x128xf32>
    %c0_73 = arith.constant 0 : index
    %c24 = arith.constant 24 : index
    %173 = vector.load %arg1[%c0_73, %c24] : memref<8x32xf32, #tpu.memory_space<vmem>>, vector<8x1xf32>
    %c24_74 = arith.constant 24 : index
    %c0_75 = arith.constant 0 : index
    %174 = vector.load %arg2[%c24_74, %c0_75] : memref<32x128xf32, #tpu.memory_space<vmem>>, vector<1x128xf32>
    %175 = vector.broadcast %173 : vector<8x1xf32> to vector<8x128xf32>
    %176 = vector.broadcast %174 : vector<1x128xf32> to vector<8x128xf32>
    %177 = arith.subf %175, %176 : vector<8x128xf32>
    %178 = math.absf %177 : vector<8x128xf32>
    %179 = arith.subf %172, %178 : vector<8x128xf32>
    %c0_76 = arith.constant 0 : index
    %c25 = arith.constant 25 : index
    %180 = vector.load %arg1[%c0_76, %c25] : memref<8x32xf32, #tpu.memory_space<vmem>>, vector<8x1xf32>
    %c25_77 = arith.constant 25 : index
    %c0_78 = arith.constant 0 : index
    %181 = vector.load %arg2[%c25_77, %c0_78] : memref<32x128xf32, #tpu.memory_space<vmem>>, vector<1x128xf32>
    %182 = vector.broadcast %180 : vector<8x1xf32> to vector<8x128xf32>
    %183 = vector.broadcast %181 : vector<1x128xf32> to vector<8x128xf32>
    %184 = arith.subf %182, %183 : vector<8x128xf32>
    %185 = math.absf %184 : vector<8x128xf32>
    %186 = arith.subf %179, %185 : vector<8x128xf32>
    %c0_79 = arith.constant 0 : index
    %c26 = arith.constant 26 : index
    %187 = vector.load %arg1[%c0_79, %c26] : memref<8x32xf32, #tpu.memory_space<vmem>>, vector<8x1xf32>
    %c26_80 = arith.constant 26 : index
    %c0_81 = arith.constant 0 : index
    %188 = vector.load %arg2[%c26_80, %c0_81] : memref<32x128xf32, #tpu.memory_space<vmem>>, vector<1x128xf32>
    %189 = vector.broadcast %187 : vector<8x1xf32> to vector<8x128xf32>
    %190 = vector.broadcast %188 : vector<1x128xf32> to vector<8x128xf32>
    %191 = arith.subf %189, %190 : vector<8x128xf32>
    %192 = math.absf %191 : vector<8x128xf32>
    %193 = arith.subf %186, %192 : vector<8x128xf32>
    %c0_82 = arith.constant 0 : index
    %c27 = arith.constant 27 : index
    %194 = vector.load %arg1[%c0_82, %c27] : memref<8x32xf32, #tpu.memory_space<vmem>>, vector<8x1xf32>
    %c27_83 = arith.constant 27 : index
    %c0_84 = arith.constant 0 : index
    %195 = vector.load %arg2[%c27_83, %c0_84] : memref<32x128xf32, #tpu.memory_space<vmem>>, vector<1x128xf32>
    %196 = vector.broadcast %194 : vector<8x1xf32> to vector<8x128xf32>
    %197 = vector.broadcast %195 : vector<1x128xf32> to vector<8x128xf32>
    %198 = arith.subf %196, %197 : vector<8x128xf32>
    %199 = math.absf %198 : vector<8x128xf32>
    %200 = arith.subf %193, %199 : vector<8x128xf32>
    %c0_85 = arith.constant 0 : index
    %c28 = arith.constant 28 : index
    %201 = vector.load %arg1[%c0_85, %c28] : memref<8x32xf32, #tpu.memory_space<vmem>>, vector<8x1xf32>
    %c28_86 = arith.constant 28 : index
    %c0_87 = arith.constant 0 : index
    %202 = vector.load %arg2[%c28_86, %c0_87] : memref<32x128xf32, #tpu.memory_space<vmem>>, vector<1x128xf32>
    %203 = vector.broadcast %201 : vector<8x1xf32> to vector<8x128xf32>
    %204 = vector.broadcast %202 : vector<1x128xf32> to vector<8x128xf32>
    %205 = arith.subf %203, %204 : vector<8x128xf32>
    %206 = math.absf %205 : vector<8x128xf32>
    %207 = arith.subf %200, %206 : vector<8x128xf32>
    %c0_88 = arith.constant 0 : index
    %c29 = arith.constant 29 : index
    %208 = vector.load %arg1[%c0_88, %c29] : memref<8x32xf32, #tpu.memory_space<vmem>>, vector<8x1xf32>
    %c29_89 = arith.constant 29 : index
    %c0_90 = arith.constant 0 : index
    %209 = vector.load %arg2[%c29_89, %c0_90] : memref<32x128xf32, #tpu.memory_space<vmem>>, vector<1x128xf32>
    %210 = vector.broadcast %208 : vector<8x1xf32> to vector<8x128xf32>
    %211 = vector.broadcast %209 : vector<1x128xf32> to vector<8x128xf32>
    %212 = arith.subf %210, %211 : vector<8x128xf32>
    %213 = math.absf %212 : vector<8x128xf32>
    %214 = arith.subf %207, %213 : vector<8x128xf32>
    %c0_91 = arith.constant 0 : index
    %c30 = arith.constant 30 : index
    %215 = vector.load %arg1[%c0_91, %c30] : memref<8x32xf32, #tpu.memory_space<vmem>>, vector<8x1xf32>
    %c30_92 = arith.constant 30 : index
    %c0_93 = arith.constant 0 : index
    %216 = vector.load %arg2[%c30_92, %c0_93] : memref<32x128xf32, #tpu.memory_space<vmem>>, vector<1x128xf32>
    %217 = vector.broadcast %215 : vector<8x1xf32> to vector<8x128xf32>
    %218 = vector.broadcast %216 : vector<1x128xf32> to vector<8x128xf32>
    %219 = arith.subf %217, %218 : vector<8x128xf32>
    %220 = math.absf %219 : vector<8x128xf32>
    %221 = arith.subf %214, %220 : vector<8x128xf32>
    %c0_94 = arith.constant 0 : index
    %c31 = arith.constant 31 : index
    %222 = vector.load %arg1[%c0_94, %c31] : memref<8x32xf32, #tpu.memory_space<vmem>>, vector<8x1xf32>
    %c31_95 = arith.constant 31 : index
    %c0_96 = arith.constant 0 : index
    %223 = vector.load %arg2[%c31_95, %c0_96] : memref<32x128xf32, #tpu.memory_space<vmem>>, vector<1x128xf32>
    %224 = vector.broadcast %222 : vector<8x1xf32> to vector<8x128xf32>
    %225 = vector.broadcast %223 : vector<1x128xf32> to vector<8x128xf32>
    %226 = arith.subf %224, %225 : vector<8x128xf32>
    %227 = math.absf %226 : vector<8x128xf32>
    %228 = arith.subf %221, %227 : vector<8x128xf32>
    %229 = tpu.iota {dimensions = array<i32: 0>} : vector<8x128xi32>
    %c8_i32_97 = arith.constant 8 : i32
    %230 = arith.muli %arg0, %c8_i32_97 : i32
    %231 = vector.broadcast %230 : i32 to vector<8x128xi32>
    %232 = arith.addi %229, %231 : vector<8x128xi32>
    %233 = tpu.iota {dimensions = array<i32: 1>} : vector<8x128xi32>
    %c12_i32 = arith.constant 12 : i32
    %234 = vector.broadcast %c12_i32 : i32 to vector<8x128xi32>
    %235 = arith.cmpi slt, %232, %234 : vector<8x128xi32>
    %c40_i32 = arith.constant 40 : i32
    %236 = vector.broadcast %c40_i32 : i32 to vector<8x128xi32>
    %237 = arith.cmpi slt, %233, %236 : vector<8x128xi32>
    %238 = arith.andi %235, %237 : vector<8x128xi1>
    %cst_98 = arith.constant -1.000000e+30 : f32
    %239 = vector.broadcast %cst_98 : f32 to vector<8x128xf32>
    %240 = arith.select %238, %228, %239 : vector<8x128xi1>, vector<8x128xf32>
    %241 = arith.index_cast %0 : i32 to index
    %c0_99 = arith.constant 0 : index
    %242 = vector.load %arg6[%241, %c0_99] : memref<16x128xf32, #tpu.memory_space<vmem>>, vector<8x128xf32>
    tpu.vector_store %arg6[%241, %c0_99], %240 {strides = array<i32>} : memref<16x128xf32, #tpu.memory_space<vmem>>, vector<8x128xf32>,
    %cst_100 = arith.constant dense<0xFF800000> : vector<128xf32>
    %243 = vector.multi_reduction <maximumf>, %240, %cst_100 [0] : vector<8x128xf32> to vector<128xf32>
    %244 = vector.shape_cast %243 : vector<128xf32> to vector<1x128xf32>
    %c0_101 = arith.constant 0 : index
    %c0_102 = arith.constant 0 : index
    %245 = vector.load %arg7[%c0_101, %c0_102] : memref<1x128xf32, #tpu.memory_space<vmem>>, vector<1x128xf32>
    %246 = arith.maximumf %245, %244 : vector<1x128xf32>
    %c0_103 = arith.constant 0 : index
    %c0_104 = arith.constant 0 : index
    %247 = vector.load %arg8[%c0_103, %c0_104] : memref<1x128xf32, #tpu.memory_space<vmem>>, vector<1x128xf32>
    %c0_105 = arith.constant 0 : index
    %c0_106 = arith.constant 0 : index
    %248 = vector.load %arg7[%c0_105, %c0_106] : memref<1x128xf32, #tpu.memory_space<vmem>>, vector<1x128xf32>
    %249 = arith.subf %248, %246 : vector<1x128xf32>
    %250 = math.exp %249 : vector<1x128xf32>
    %251 = arith.mulf %247, %250 : vector<1x128xf32>
    %252 = vector.broadcast %246 : vector<1x128xf32> to vector<8x128xf32>
    %253 = arith.subf %240, %252 : vector<8x128xf32>
    %254 = math.exp %253 : vector<8x128xf32>
    %cst_107 = arith.constant dense<0.000000e+00> : vector<128xf32>
    %255 = vector.multi_reduction <add>, %254, %cst_107 [0] : vector<8x128xf32> to vector<128xf32>
    %256 = vector.shape_cast %255 : vector<128xf32> to vector<1x128xf32>
    %257 = arith.addf %251, %256 : vector<1x128xf32>
    %c0_108 = arith.constant 0 : index
    %c0_109 = arith.constant 0 : index
    %258 = vector.load %arg8[%c0_108, %c0_109] : memref<1x128xf32, #tpu.memory_space<vmem>>, vector<1x128xf32>
    tpu.vector_store %arg8[%c0_108, %c0_109], %257 {strides = array<i32>} : memref<1x128xf32, #tpu.memory_space<vmem>>, vector<1x128xf32>,
    %c0_110 = arith.constant 0 : index
    %c0_111 = arith.constant 0 : index
    %259 = vector.load %arg7[%c0_110, %c0_111] : memref<1x128xf32, #tpu.memory_space<vmem>>, vector<1x128xf32>
    tpu.vector_store %arg7[%c0_110, %c0_111], %246 {strides = array<i32>} : memref<1x128xf32, #tpu.memory_space<vmem>>, vector<1x128xf32>,
    %c1_i32 = arith.constant 1 : i32
    %260 = arith.cmpi eq, %arg0, %c1_i32 : i32
    %261 = arith.extui %260 : i1 to i32
    %c0_i32_112 = arith.constant 0 : i32
    %262 = arith.cmpi ne, %261, %c0_i32_112 : i32
    scf.if %262 {
      %c0_113 = arith.constant 0 : index
      %c0_114 = arith.constant 0 : index
      %263 = vector.load %arg6[%c0_113, %c0_114] : memref<16x128xf32, #tpu.memory_space<vmem>>, vector<16x128xf32>
      %cst_115 = arith.constant dense<0xFF800000> : vector<16xf32>
      %264 = vector.multi_reduction <maximumf>, %263, %cst_115 [1] : vector<16x128xf32> to vector<16xf32>
      %265 = vector.shape_cast %264 : vector<16xf32> to vector<16x1xf32>
      %266 = vector.broadcast %265 : vector<16x1xf32> to vector<16x128xf32>
      %267 = arith.subf %263, %266 : vector<16x128xf32>
      %268 = math.exp %267 : vector<16x128xf32>
      %cst_116 = arith.constant dense<0.000000e+00> : vector<16xf32>
      %269 = vector.multi_reduction <add>, %268, %cst_116 [1] : vector<16x128xf32> to vector<16xf32>
      %270 = vector.shape_cast %269 : vector<16xf32> to vector<16x1xf32>
      %cst_117 = arith.constant 1.000000e+00 : f32
      %271 = vector.broadcast %cst_117 : f32 to vector<16x1xf32>
      %272 = arith.divf %271, %270 : vector<16x1xf32>
      %273 = vector.broadcast %272 : vector<16x1xf32> to vector<16x128xf32>
      %274 = arith.mulf %268, %273 : vector<16x128xf32>
      %c0_118 = arith.constant 0 : index
      %c0_119 = arith.constant 0 : index
      %275 = vector.load %arg7[%c0_118, %c0_119] : memref<1x128xf32, #tpu.memory_space<vmem>>, vector<1x128xf32>
      %276 = vector.broadcast %275 : vector<1x128xf32> to vector<16x128xf32>
      %277 = arith.subf %263, %276 : vector<16x128xf32>
      %278 = math.exp %277 : vector<16x128xf32>
      %c0_120 = arith.constant 0 : index
      %c0_121 = arith.constant 0 : index
      %279 = vector.load %arg8[%c0_120, %c0_121] : memref<1x128xf32, #tpu.memory_space<vmem>>, vector<1x128xf32>
      %cst_122 = arith.constant 1.000000e+00 : f32
      %280 = vector.broadcast %cst_122 : f32 to vector<1x128xf32>
      %281 = arith.divf %280, %279 : vector<1x128xf32>
      %282 = vector.broadcast %281 : vector<1x128xf32> to vector<16x128xf32>
      %283 = arith.mulf %278, %282 : vector<16x128xf32>
      %284 = tpu.iota {dimensions = array<i32: 0>} : vector<16x128xi32>
      %285 = tpu.iota {dimensions = array<i32: 1>} : vector<16x128xi32>
      %c12_i32_123 = arith.constant 12 : i32
      %286 = vector.broadcast %c12_i32_123 : i32 to vector<16x128xi32>
      %287 = arith.cmpi slt, %284, %286 : vector<16x128xi32>
      %c40_i32_124 = arith.constant 40 : i32
      %288 = vector.broadcast %c40_i32_124 : i32 to vector<16x128xi32>
      %289 = arith.cmpi slt, %285, %288 : vector<16x128xi32>
      %290 = arith.andi %287, %289 : vector<16x128xi1>
      %291 = arith.addf %274, %283 : vector<16x128xf32>
      %292 = arith.mulf %274, %283 : vector<16x128xf32>
      %293 = arith.subf %291, %292 : vector<16x128xf32>
      %cst_125 = arith.constant 0.000000e+00 : f32
      %294 = vector.broadcast %cst_125 : f32 to vector<16x128xf32>
      %295 = arith.select %290, %293, %294 : vector<16x128xi1>, vector<16x128xf32>
      %296 = arith.mulf %295, %263 : vector<16x128xf32>
      %297 = vector.shape_cast %296 : vector<16x128xf32> to vector<1x16x128xf32>
      %cst_126 = arith.constant dense<0.000000e+00> : vector<1xf32>
      %298 = vector.multi_reduction <add>, %297, %cst_126 [1, 2] : vector<1x16x128xf32> to vector<1xf32>
      %299 = vector.shape_cast %298 : vector<1xf32> to vector<1x1x1xf32>
      %300 = vector.extract %299[0, 0, 0] : f32 from vector<1x1x1xf32>
      %301 = vector.shape_cast %295 : vector<16x128xf32> to vector<1x16x128xf32>
      %cst_127 = arith.constant dense<0.000000e+00> : vector<1xf32>
      %302 = vector.multi_reduction <add>, %301, %cst_127 [1, 2] : vector<1x16x128xf32> to vector<1xf32>
      %303 = vector.shape_cast %302 : vector<1xf32> to vector<1x1x1xf32>
      %304 = vector.extract %303[0, 0, 0] : f32 from vector<1x1x1xf32>
      %305 = arith.divf %300, %304 : f32
      %c0_128 = arith.constant 0 : index
      %c0_129 = arith.constant 0 : index
      %306 = vector.load %arg3[%c0_128, %c0_129] : memref<1x128xf32, #tpu.memory_space<vmem>>, vector<1x128xf32>
      %307 = vector.broadcast %305 : f32 to vector<1x128xf32>
      %308 = arith.mulf %307, %306 : vector<1x128xf32>
      %c0_130 = arith.constant 0 : index
      %c0_131 = arith.constant 0 : index
      %309 = vector.load %arg4[%c0_130, %c0_131] : memref<1x128xf32, #tpu.memory_space<vmem>>, vector<1x128xf32>
      %310 = arith.addf %308, %309 : vector<1x128xf32>
      %c0_132 = arith.constant 0 : index
      %c0_133 = arith.constant 0 : index
      %311 = vector.load %arg5[%c0_132, %c0_133] : memref<1x128xf32, #tpu.memory_space<vmem>>, vector<1x128xf32>
      tpu.vector_store %arg5[%c0_132, %c0_133], %310 {strides = array<i32>} : memref<1x128xf32, #tpu.memory_space<vmem>>, vector<1x128xf32>,
    } else {
    }
    return
  }
  func.func @transform_0(%arg0: i32) -> (i32, i32) {
    %c0_i32 = arith.constant 0 : i32
    %c0_i32_0 = arith.constant 0 : i32
    return %arg0, %c0_i32 : i32, i32
  }
  func.func @transform_1(%arg0: i32) -> (i32, i32) {
    %c0_i32 = arith.constant 0 : i32
    %c0_i32_0 = arith.constant 0 : i32
    %c0_i32_1 = arith.constant 0 : i32
    return %c0_i32, %c0_i32_0 : i32, i32
  }
  func.func @transform_2(%arg0: i32) -> (i32, i32) {
    %c0_i32 = arith.constant 0 : i32
    %c0_i32_0 = arith.constant 0 : i32
    %c0_i32_1 = arith.constant 0 : i32
    return %c0_i32, %c0_i32_0 : i32, i32
  }
  func.func @transform_3(%arg0: i32) -> (i32, i32) {
    %c0_i32 = arith.constant 0 : i32
    %c0_i32_0 = arith.constant 0 : i32
    %c0_i32_1 = arith.constant 0 : i32
    return %c0_i32, %c0_i32_0 : i32, i32
  }
  func.func @transform_4(%arg0: i32) -> (i32, i32) {
    %c0_i32 = arith.constant 0 : i32
    %c0_i32_0 = arith.constant 0 : i32
    %c0_i32_1 = arith.constant 0 : i32
    return %c0_i32, %c0_i32_0 : i32, i32
  }
}

</mosaic_0001>

<bundles_post_ra>
// kernel: tpu_custom_call.1
= control target key start
LH: loop header
LB: loop body
LE: loop exit
PB: predicated region body
PF: predicated region fallthrough
CT: control target
= control target key end

     0   :  { %9 = vsyncpa [#allocation6], 0  ;;  %s1429_s0 = inlined_call_operand.hbm [shape: f32[16,32], index: 0, kind: input, shape index: {}]   ;;  %s1430_s1 = inlined_call_operand.hbm [shape: f32[32,128], index: 1, kind: input, shape index: {}]   ;;  %s1431_s2 = inlined_call_operand.vmem [shape: f32[1,128], index: 2, kind: input, shape index: {}]   ;;  %s1432_s3 = inlined_call_operand.vmem [shape: f32[1,128], index: 3, kind: input, shape index: {}]   ;;  %s1433_s4 = inlined_call_operand.hbm [shape: f32[1,128], index: 4, kind: output, shape index: {}]  }
   0x1   :  { %11 = vsyncpa [#allocation6 + $0x1], 0 }
   0x2   :  { %12 = vsyncpa [#allocation9], 0 }
   0x3   :  { %13 = vsyncpa [#allocation7], 0  ;;  %s1209_s15 = smov 0   ;;  %s1211_s16 = smov 0  }
   0x4   :  { %s1213_s17 = smov 0   ;;  %s1215_s18 = smov 0  }
   0x5 LB: > { %s1228_s19 = sadd.s32 4294967295, %s1143_s18   ;;  %p39_p0 = scmp.ne.s32.totalorder %s1135_s16, %s1131_s15  ;;  %s1143_s18 = sphi %s1215_s18, %s1449_s18   ;;  %s1139_s17 = sphi %s1213_s17, %s1448_s17   ;;  %s1135_s16 = sphi %s1211_s16, %s1447_s16   ;;  %s1131_s15 = sphi %s1209_s15, %s1446_s15  }
   0x6   : > { %p1434_p1 = scmp.eq.s32.totalorder %s1228_s19, 0  ;;  %p817_p2 = scmp.ge.s32.totalorder %s1143_s18, 1 }
   0x7   : > { %p134_p3 = scmp.lt.s32.totalorder %s1143_s18, 3  ;;  %s1145_s22 = smov [#allocation8]  }
   0x8   : > { %p1237_p5 = por %p1434_p1, %p39_p0  ;;  %s146_s23 = sshll.u32 %s1145_s22, 4  ;;  %s147_s23 = int_to_ptr.vmem [resolvable:$true] %s146_s23 }
   0x9   : > { %p1241_p6 = pnand %p817_p2, %p134_p3  ;;  %s1254_s25 = sadd.s32 1, %s1143_s18  }
   0xa   : > { %s1437_s20 = scalar_select %p1237_p5, 1, 0 }
   0xb   : > { %s1438_s21 = scalar_select %p1241_p6, 1, 0 }
   0xc   : > { %p881_p7 = pneg %p1241_p6  ;;  %s26_s26 = sadd.s32 1, %s1139_s17 }
   0xd   : > { %s23_s27 = ssub.s32 %s1143_s18, %s1254_s25  ;;  %s1017_s30 = scalar_lea.hbm %s1430_s1, 512 }
   0xe   : > { %p1249_p8 = pnand %p881_p7, %p1434_p1  ;;  %p1018_p9 = scmp.ne.s32.totalorder %s1430_s1, %s1017_s30 }
   0xf   : > { %p1024_p13 = scmp.lt.u32.totalorder %s1017_s30, %s1430_s1 }
  0x10   : > { %p1019_p10 = pneg %p1249_p8 }
  0x12   : > { %p1020_p11 = pnand %p1019_p10, %p1018_p9 }
  0x14   : > { %p1021_p12 = pneg %p1020_p11 }
  0x16   : > { %p1026_p0 = pnand %p1024_p13, %p1021_p12 }
  0x18   : > { %1029 = shalt.err (!%p1026_p0)
}
  0x19   : > { %s1030_s9 = scalar_lea.vmem %s147_s23, 512  ;;  %p1038_p4 = scmp.lt.s32.totalorder %s147_s23, %s147_s23 }
  0x1a   : > { %p1031_p2 = scmp.ne.s32.totalorder %s147_s23, %s1030_s9  ;;  %p1039_p1 = scmp.lt.s32.totalorder %s1030_s9, %s1030_s9 }
  0x1c   : > { %p1033_p3 = pnand %p1031_p2, %p1019_p10  ;;  %p1040_p5 = por %p1039_p1, %p1038_p4 }
  0x1e   : > { %p1034_p7 = pneg %p1033_p3 }
  0x20   : > { %p1041_p6 = pnand %p1040_p5, %p1034_p7 }
  0x22   : > { %1044 = shalt.err (!%p1041_p6)
}
  0x23   : > { %s1146_s10 = smov 128   ;;  %s1147_s11 = smov 8  }
  0x24   : > { %884 = dma.hbm_to_vmem [thread:$0]  (!%p1249_p8), %s1430_s1, 512, %s147_s23, [#allocation9], %s1146_s10, %s1146_s10, %s1147_s11  }
  0x25   : > { %p24_p9 = scmp.eq.s32.totalorder %s23_s27, 0  ;;  %p33_p10 = scmp.ne.s32.totalorder %s1139_s17, %s1135_s16 }
  0x26   : > { %p34_p1 = scmp.eq.s32.totalorder %s1143_s18, 0  ;;  %p890_p4 = scmp.lt.s32.totalorder %s1143_s18, 2 }
  0x27   : > { %s1280_s14 = scalar_select %p24_p9, %s1139_s17, %s26_s26  }
  0x28   : > { %p35_p5 = por %p34_p1, %p33_p10  ;;  %s166_s15 = sand.u32 1, %s1139_s17  }
  0x29   : > { %s820_s22 = sshll.u32 %s166_s15, 3  ;;  %s821_s28 = sshll.u32 %s1143_s18, 7 }
  0x2a   : > { %s1287_s5 = scalar_lea.hbm %s1429_s0, %s821_s28  ;;  %s170_s23 = scalar_lea.vmem [#allocation5], %s820_s22 }
  0x2b   : > { %s177_s24 = sshll.u32 %s170_s23, 4  ;;  %p1291_p6 = pnand %p890_p4, %p35_p5  ;;  %s1289_s24 = int_to_ptr.vmem [resolvable:$true] %s177_s24 }
  0x2c   : > { %s167_s18 = scalar_lea.sflag [#allocation6], %s166_s15  ;;  %s1045_s27 = scalar_lea.hbm %s1287_s5, 128 }
  0x2d   : > { %p1046_p8 = scmp.ne.s32.totalorder %s1287_s5, %s1045_s27  ;;  %p1047_p11 = pneg %p1291_p6 }
  0x2e   : > { %s1050_s8 = scalar_lea.hbm %s1429_s0, 256  ;;  %p1051_p0 = scmp.lt.u32.totalorder %s1287_s5, %s1429_s0 }
  0x2f   : > { %p1048_p12 = pnand %p1047_p11, %p1046_p8  ;;  %p1052_p2 = scmp.lt.u32.totalorder %s1050_s8, %s1045_s27 }
  0x30   : > { %p1054_p7 = scmp.lt.u32.totalorder %s1045_s27, %s1287_s5 }
  0x31   : > { %p1049_p13 = pneg %p1048_p12  ;;  %p1053_p3 = por %p1052_p2, %p1051_p0 }
  0x33   : > { %p1055_p9 = por %p1054_p7, %p1053_p3 }
  0x35   : > { %p1056_p10 = pnand %p1055_p9, %p1049_p13 }
  0x37   : > { %1059 = shalt.err (!%p1056_p10)
}
  0x38   : > { %s1060_s11 = scalar_lea.vmem %s1289_s24, 128  ;;  %s1148_s12 = smov [#allocation5]  }
  0x39   : > { %p1061_p1 = scmp.ne.s32.totalorder %s1289_s24, %s1060_s11  ;;  %s1065_s13 = sshll.u32 %s1148_s12, 4  ;;  %s1066_s13 = int_to_ptr.vmem [resolvable:$false] %s1065_s13 }
  0x3a   : > { %s1067_s15 = scalar_lea.vmem %s1066_s13, 256  ;;  %p1068_p8 = scmp.lt.s32.totalorder %s1289_s24, %s1066_s13 }
  0x3b   : > { %p1063_p4 = pnand %p1061_p1, %p1047_p11  ;;  %p1069_p12 = scmp.lt.s32.totalorder %s1067_s15, %s1060_s11 }
  0x3d   : > { %p1064_p5 = pneg %p1063_p4  ;;  %p1070_p0 = por %p1069_p12, %p1068_p8 }
  0x3f   : > { %p1071_p2 = pnand %p1070_p0, %p1064_p5 }
  0x41   : > { %1074 = shalt.err (!%p1071_p2)
}
  0x42   : > { %888 = dma.hbm_to_vmem [thread:$0]  (!%p1291_p6), %s1287_s5, 128, %s1289_s24, %s167_s18  }
  0x43   : > { %p1441_p13 = scmp.ne.s32.totalorder %s1438_s21, 0 }
  0x44   : > { %s188_s22 = sand.u32 (!%p1441_p13), 1, %s1135_s16   ;;  %p1442_p11 = scmp.ne.s32.totalorder (!%p1441_p13), %s1437_s20, 0 }
  0x45   : > { %186 = sbr.rel (%p1441_p13) target bundleno = 959 (0x3bf), region = 36  ;;  %s823_s28 = sshll.u32 (!%p1441_p13), %s188_s22, 3 }
  0x46   : > { %s189_s29 = scalar_lea.sflag (!%p1441_p13), [#allocation6], %s188_s22  ;;  %s192_s30 = scalar_lea.vmem (!%p1441_p13), [#allocation5], %s823_s28 }
  0x4c   : > { %1118 = dma.done.wait (%p1442_p11), %s189_s29, 128  }
  0x4d   : > { %1120 = vsyncadd (%p1442_p11), %s189_s29, 4294967168  ;;  %p1443_p3 = scmp.eq.s32.totalorder %s1228_s19, 0 }
  0x4f   : > { %1122 = dma.done.wait (%p1443_p3), [#allocation9], 512   ;;  %p1444_p7 = pmov %p1443_p3 }
  0x50   : > { %s825_s21 = sshll.u32 %s1228_s19, 3  ;;  %p1445_p6 = scmp.ne.s32.totalorder %s1228_s19, 0 }
  0x51   : > { %1124 = vsyncadd (%p1444_p7), [#allocation9], 4294966784  ;;  %v1149_v0 = vmov (!%p1445_p6), -1e+30   ;;  %v1150_v1 = vmov (!%p1445_p6), 0.0  }
  0x52   : > { %220 = sbr.rel (%p1445_p6) target bundleno = 89 (0x59), region = 48  ;;  %221 = vst [vmem:[#allocation3] sm:$0x1] (!%p1445_p6), %v1149_v0  ;;  %222 = vst [vmem:[#allocation4] sm:$0x1] (!%p1445_p6), %v1150_v1 }
  0x59 PF: > { %v1334_v2 = vld [vmem:[%s192_s30] sm:$0xff]  ;;  %v1151_v3 = vmov 2   ;;  %v1152_v4 = vmov 0   ;;  %v1153_v5 = vmov 3   ;;  %v1154_v6 = vmov 1   ;;  %s619_s20 = scalar_lea.vmem [#allocation2], %s825_s21 }
  0x5a   : > { %966 = vset.pattern.permute.xlu1 %v1151_v3  ;;  %964 = vset.pattern.permute.xlu0 %v1152_v4  ;;  %v1155_v7 = vmov 4   ;;  %v1156_v8 = vmov 5   ;;  %v1157_v9 = vmov 6   ;;  %v1158_v10 = vmov 8   ;;  %v827_v35 = vld [vmem:[#allocation8] ss:$0 sm:$0xff] }
  0x5b   : > { %251 = vperm.xlu1 %966, %v1334_v2   ;;  %227 = vperm.xlu0 %964, %v1334_v2   ;;  %v1159_v11 = vmov 7   ;;  %v1160_v12 = vmov 11   ;;  %v1161_v13 = vmov 9   ;;  %v1162_v14 = vmov 14   ;;  %v829_v39 = vld [vmem:[#allocation8 + $0x2] ss:$0 sm:$0xff] }
  0x5c   : > { %v1163_v15 = vmov 10   ;;  %v1164_v16 = vmov 17   ;;  %v1165_v17 = vmov 12   ;;  %v1166_v18 = vmov 20   ;;  %v828_v41 = vld [vmem:[#allocation8 + $0x1] ss:$0 sm:$0xff] }
  0x5d   : > { %v1167_v19 = vmov 13   ;;  %v1168_v20 = vmov 23   ;;  %v1169_v21 = vmov 15   ;;  %v1170_v22 = vmov 26   ;;  %v830_v42 = vld [vmem:[#allocation8 + $0x3] ss:$0 sm:$0xff] }
  0x5e   : > { %v1171_v23 = vmov 16   ;;  %v1172_v24 = vmov 29   ;;  %v1173_v25 = vmov 18   ;;  %v1174_v26 = vmov 31   ;;  %v831_v50 = vld [vmem:[#allocation8 + $0x4] ss:$0 sm:$0xff] }
  0x5f   : > { %967 = vset.pattern.permute.xlu1 %v1153_v5  ;;  %965 = vset.pattern.permute.xlu0 %v1154_v6  ;;  %v1175_v27 = vmov 19   ;;  %v1176_v28 = vmov 21   ;;  %v1177_v29 = vmov 22   ;;  %v1178_v30 = vmov 24   ;;  %v832_v51 = vld [vmem:[#allocation8 + $0x5] ss:$0 sm:$0xff] }
  0x60   : > { %263 = vperm.xlu1 %967, %v1334_v2   ;;  %239 = vperm.xlu0 %965, %v1334_v2   ;;  %v1179_v31 = vmov 25   ;;  %v1180_v32 = vmov 27   ;;  %v1181_v33 = vmov 28   ;;  %v1182_v34 = vmov 30   ;;  %v833_v61 = vld [vmem:[#allocation8 + $0x6] ss:$0 sm:$0xff] }
  0x61   : > { %v834_v3 = vld [vmem:[#allocation8 + $0x7] ss:$0 sm:$0xff]  ;;  %v835_v4 = vld [vmem:[#allocation8 + $0x8] ss:$0 sm:$0xff]  ;;  %p859_p9 = scmp.ne.s32.totalorder %s1228_s19, 1 }
  0x64   : > { %968 = vset.pattern.permute.xlu1 %v1155_v7  ;;  %969 = vset.pattern.permute.xlu0 %v1156_v8 }
  0x65   : > { %275 = vperm.xlu1 %968, %v1334_v2   ;;  %287 = vperm.xlu0 %969, %v1334_v2  }
  0x69   : > { %970 = vset.pattern.permute.xlu1 %v1157_v9  ;;  %972 = vset.pattern.permute.xlu0 %v1158_v10 }
  0x6a   : > { %299 = vperm.xlu1 %970, %v1334_v2   ;;  %323 = vperm.xlu0 %972, %v1334_v2  }
  0x6e   : > { %971 = vset.pattern.permute.xlu1 %v1159_v11  ;;  %975 = vset.pattern.permute.xlu0 %v1160_v12 }
  0x6f   : > { %311 = vperm.xlu1 %971, %v1334_v2   ;;  %359 = vperm.xlu0 %975, %v1334_v2  }
  0x73   : > { %973 = vset.pattern.permute.xlu1 %v1161_v13  ;;  %978 = vset.pattern.permute.xlu0 %v1162_v14  ;;  %v836_v13 = vld [vmem:[#allocation8 + $0x9] ss:$0 sm:$0xff] }
  0x74   : > { %335 = vperm.xlu1 %973, %v1334_v2   ;;  %395 = vperm.xlu0 %978, %v1334_v2  }
  0x78   : > { %974 = vset.pattern.permute.xlu1 %v1163_v15  ;;  %981 = vset.pattern.permute.xlu0 %v1164_v16 }
  0x79   : > { %347 = vperm.xlu1 %974, %v1334_v2   ;;  %431 = vperm.xlu0 %981, %v1334_v2  }
  0x7d   : > { %976 = vset.pattern.permute.xlu1 %v1165_v17  ;;  %984 = vset.pattern.permute.xlu0 %v1166_v18  ;;  %v837_v18 = vld [vmem:[#allocation8 + $0xa] ss:$0 sm:$0xff] }
  0x7e   : > { %371 = vperm.xlu1 %976, %v1334_v2   ;;  %467 = vperm.xlu0 %984, %v1334_v2  }
  0x82   : > { %977 = vset.pattern.permute.xlu1 %v1167_v19  ;;  %987 = vset.pattern.permute.xlu0 %v1168_v20  ;;  %v838_v19 = vld [vmem:[#allocation8 + $0xb] ss:$0 sm:$0xff] }
  0x83   : > { %383 = vperm.xlu1 %977, %v1334_v2   ;;  %503 = vperm.xlu0 %987, %v1334_v2  }
  0x87   : > { %979 = vset.pattern.permute.xlu1 %v1169_v21  ;;  %990 = vset.pattern.permute.xlu0 %v1170_v22 }
  0x88   : > { %407 = vperm.xlu1 %979, %v1334_v2   ;;  %539 = vperm.xlu0 %990, %v1334_v2  }
  0x8c   : > { %980 = vset.pattern.permute.xlu1 %v1171_v23  ;;  %993 = vset.pattern.permute.xlu0 %v1172_v24 }
  0x8d   : > { %419 = vperm.xlu1 %980, %v1334_v2   ;;  %575 = vperm.xlu0 %993, %v1334_v2  }
  0x91   : > { %982 = vset.pattern.permute.xlu1 %v1173_v25  ;;  %996 = vset.pattern.permute.xlu0 %v1174_v26 }
  0x92   : > { %443 = vperm.xlu1 %982, %v1334_v2  }
  0x96   : > { %983 = vset.pattern.permute.xlu1 %v1175_v27 }
  0x97   : > { %455 = vperm.xlu1 %983, %v1334_v2  }
  0x9b   : > { %985 = vset.pattern.permute.xlu1 %v1176_v28  ;;  %v839_v28 = vld [vmem:[#allocation8 + $0xc] ss:$0 sm:$0xff] }
  0x9c   : > { %479 = vperm.xlu1 %985, %v1334_v2  }
  0xa0   : > { %986 = vset.pattern.permute.xlu1 %v1177_v29 }
  0xa1   : > { %491 = vperm.xlu1 %986, %v1334_v2  }
  0xa5   : > { %988 = vset.pattern.permute.xlu1 %v1178_v30 }
  0xa6   : > { %515 = vperm.xlu1 %988, %v1334_v2  }
  0xaa   : > { %989 = vset.pattern.permute.xlu1 %v1179_v31 }
  0xab   : > { %527 = vperm.xlu1 %989, %v1334_v2  }
  0xaf   : > { %991 = vset.pattern.permute.xlu1 %v1180_v32 }
  0xb0   : > { %551 = vperm.xlu1 %991, %v1334_v2  }
  0xb4   : > { %992 = vset.pattern.permute.xlu1 %v1181_v33  ;;  %v840_v33 = vld [vmem:[#allocation8 + $0xd] ss:$0 sm:$0xff] }
  0xb5   : > { %563 = vperm.xlu1 %992, %v1334_v2  }
  0xb9   : > { %994 = vset.pattern.permute.xlu1 %v1182_v34  ;;  %v841_v34 = vld [vmem:[#allocation8 + $0xe] ss:$0 sm:$0xff] }
  0xba   : > { %587 = vperm.xlu1 %994, %v1334_v2  }
  0xbe   : > { %995 = vset.pattern.permute.xlu1 %v1174_v26 }
  0xbf   : > { %599 = vperm.xlu1 %995, %v1334_v2  }
  0xda   : > { %v252_v36 = vpop.permute.xlu1 %251  ;;  %v228_v37 = vpop.permute.xlu0 %227 }
  0xdb   : > { %v234_v38 = vsub.f32 %v228_v37, %v827_v35  ;;  %v258_v45 = vsub.f32 %v252_v36, %v829_v39 }
  0xdd   : > { %v235_v40 = vand.u32 2147483647, %v234_v38  ;;  %v259_v52 = vand.u32 2147483647, %v258_v45 }
  0xdf   : > { %v264_v43 = vpop.permute.xlu1 %263  ;;  %v240_v44 = vpop.permute.xlu0 %239  ;;  %v236_v46 = vsub.f32 0.0, %v235_v40 }
  0xe0   : > { %v246_v47 = vsub.f32 %v240_v44, %v828_v41  ;;  %v270_v48 = vsub.f32 %v264_v43, %v830_v42  ;;  %v842_v43 = vld [vmem:[#allocation8 + $0xf] ss:$0 sm:$0xff] }
  0xe2   : > { %v247_v49 = vand.u32 2147483647, %v246_v47  ;;  %v271_v58 = vand.u32 2147483647, %v270_v48  ;;  %v843_v48 = vld [vmem:[#allocation8 + $0x10] ss:$0 sm:$0xff] }
  0xe4   : > { %v248_v53 = vsub.f32 %v236_v46, %v247_v49  ;;  %v276_v54 = vpop.permute.xlu1 %275  ;;  %v288_v55 = vpop.permute.xlu0 %287  ;;  %v844_v49 = vld [vmem:[#allocation8 + $0x11] ss:$0 sm:$0xff] }
  0xe5   : > { %v282_v56 = vsub.f32 %v276_v54, %v831_v50  ;;  %v294_v57 = vsub.f32 %v288_v55, %v832_v51 }
  0xe6   : > { %v260_v59 = vsub.f32 %v248_v53, %v259_v52 }
  0xe7   : > { %v283_v60 = vand.u32 2147483647, %v282_v56  ;;  %v295_v63 = vand.u32 2147483647, %v294_v57 }
  0xe8   : > { %v272_v62 = vsub.f32 %v260_v59, %v271_v58  ;;  %v845_v58 = vld [vmem:[#allocation8 + $0x12] ss:$0 sm:$0xff] }
  0xe9   : > { %v300_v0 = vpop.permute.xlu1 %299  ;;  %v324_v5 = vpop.permute.xlu0 %323 }
  0xea   : > { %v284_v1 = vsub.f32 %v272_v62, %v283_v60  ;;  %v306_v2 = vsub.f32 %v300_v0, %v833_v61  ;;  %v330_v10 = vsub.f32 %v324_v5, %v835_v4  ;;  %v847_v0 = vld [vmem:[#allocation8 + $0x14] ss:$0 sm:$0xff] }
  0xec   : > { %v296_v6 = vsub.f32 %v284_v1, %v295_v63  ;;  %v307_v7 = vand.u32 2147483647, %v306_v2  ;;  %v331_v15 = vand.u32 2147483647, %v330_v10  ;;  %v846_v63 = vld [vmem:[#allocation8 + $0x13] ss:$0 sm:$0xff] }
  0xee   : > { %v312_v8 = vpop.permute.xlu1 %311  ;;  %v308_v11 = vsub.f32 %v296_v6, %v307_v7  ;;  %v360_v20 = vpop.permute.xlu0 %359 }
  0xef   : > { %v318_v9 = vsub.f32 %v312_v8, %v834_v3  ;;  %v366_v25 = vsub.f32 %v360_v20, %v838_v19 }
  0xf1   : > { %v319_v12 = vand.u32 2147483647, %v318_v9  ;;  %v367_v30 = vand.u32 2147483647, %v366_v25  ;;  %v848_v9 = vld [vmem:[#allocation8 + $0x15] ss:$0 sm:$0xff] }
  0xf3   : > { %v320_v14 = vsub.f32 %v308_v11, %v319_v12  ;;  %v336_v16 = vpop.permute.xlu1 %335  ;;  %v396_v35 = vpop.permute.xlu0 %395 }
  0xf4   : > { %v342_v17 = vsub.f32 %v336_v16, %v836_v13  ;;  %v402_v40 = vsub.f32 %v396_v35, %v841_v34 }
  0xf5   : > { %v332_v21 = vsub.f32 %v320_v14, %v331_v15  ;;  %v849_v14 = vld [vmem:[#allocation8 + $0x16] ss:$0 sm:$0xff]  ;;  %v850_v15 = vld [vmem:[#allocation8 + $0x17] ss:$0 sm:$0xff] }
  0xf6   : > { %v343_v22 = vand.u32 2147483647, %v342_v17  ;;  %v403_v45 = vand.u32 2147483647, %v402_v40 }
  0xf8   : > { %v348_v23 = vpop.permute.xlu1 %347  ;;  %v344_v26 = vsub.f32 %v332_v21, %v343_v22  ;;  %v432_v50 = vpop.permute.xlu0 %431 }
  0xf9   : > { %v354_v24 = vsub.f32 %v348_v23, %v837_v18  ;;  %v438_v55 = vsub.f32 %v432_v50, %v844_v49  ;;  %v609_v49 = vlaneseq }
  0xfb   : > { %v355_v27 = vand.u32 2147483647, %v354_v24  ;;  %v439_v60 = vand.u32 2147483647, %v438_v55  ;;  %v851_v24 = vld [vmem:[#allocation8 + $0x18] ss:$0 sm:$0xff] }
  0xfc   : > { %v857_v55 = vld [vmem:[#allocation8 + $0x1e] ss:$0 sm:$0xff] }
  0xfd   : > { %v356_v29 = vsub.f32 %v344_v26, %v355_v27  ;;  %v372_v31 = vpop.permute.xlu1 %371  ;;  %v468_v1 = vpop.permute.xlu0 %467 }
  0xfe   : > { %v378_v32 = vsub.f32 %v372_v31, %v839_v28  ;;  %v474_v6 = vsub.f32 %v468_v1, %v847_v0  ;;  %v858_v0 = vld [vmem:[#allocation8 + $0x1f] ss:$0 sm:$0xff] }
  0xff   : > { %v368_v36 = vsub.f32 %v356_v29, %v367_v30  ;;  %v852_v29 = vld [vmem:[#allocation8 + $0x19] ss:$0 sm:$0xff]  ;;  %v853_v30 = vld [vmem:[#allocation8 + $0x1a] ss:$0 sm:$0xff] }
 0x100   : > { %v379_v37 = vand.u32 2147483647, %v378_v32  ;;  %v475_v11 = vand.u32 2147483647, %v474_v6 }
 0x102   : > { %v384_v38 = vpop.permute.xlu1 %383  ;;  %v380_v41 = vsub.f32 %v368_v36, %v379_v37  ;;  %v504_v16 = vpop.permute.xlu0 %503 }
 0x103   : > { %v390_v39 = vsub.f32 %v384_v38, %v840_v33  ;;  %v510_v21 = vsub.f32 %v504_v16, %v850_v15 }
 0x105   : > { %v391_v42 = vand.u32 2147483647, %v390_v39  ;;  %v511_v26 = vand.u32 2147483647, %v510_v21  ;;  %v854_v39 = vld [vmem:[#allocation8 + $0x1b] ss:$0 sm:$0xff] }
 0x107   : > { %v392_v44 = vsub.f32 %v380_v41, %v391_v42  ;;  %v408_v46 = vpop.permute.xlu1 %407  ;;  %v540_v31 = vpop.permute.xlu0 %539 }
 0x108   : > { %v414_v47 = vsub.f32 %v408_v46, %v842_v43  ;;  %v546_v36 = vsub.f32 %v540_v31, %v853_v30 }
 0x109   : > { %v404_v51 = vsub.f32 %v392_v44, %v403_v45  ;;  %v855_v44 = vld [vmem:[#allocation8 + $0x1c] ss:$0 sm:$0xff]  ;;  %v856_v45 = vld [vmem:[#allocation8 + $0x1d] ss:$0 sm:$0xff] }
 0x10a   : > { %v415_v52 = vand.u32 2147483647, %v414_v47  ;;  %v547_v41 = vand.u32 2147483647, %v546_v36 }
 0x10c   : > { %v420_v53 = vpop.permute.xlu1 %419  ;;  %v416_v56 = vsub.f32 %v404_v51, %v415_v52  ;;  %v576_v46 = vpop.permute.xlu0 %575 }
 0x10d   : > { %v426_v54 = vsub.f32 %v420_v53, %v843_v48  ;;  %v582_v52 = vsub.f32 %v576_v46, %v856_v45 }
 0x10f   : > { %v427_v57 = vand.u32 2147483647, %v426_v54 }
 0x111   : > { %v428_v59 = vsub.f32 %v416_v56, %v427_v57  ;;  %v444_v61 = vpop.permute.xlu1 %443  ;;  %v1368_v56 = vshrl.u32 %v609_v49, 7  ;;  %v611_v57 = vstv %s825_s21 }
 0x112   : > { %v450_v62 = vsub.f32 %v444_v61, %v845_v58 }
 0x113   : > { %v440_v2 = vsub.f32 %v428_v59, %v439_v60  ;;  %v583_v59 = vand.u32 2147483647, %v582_v52  ;;  %v637_v15 = vsub.s32 0, %v1368_v56 }
 0x114   : > { %v451_v3 = vand.u32 2147483647, %v450_v62  ;;  %v612_v62 = vadd.s32 %v611_v57, %v1368_v56 }
 0x116   : > { %v456_v4 = vpop.permute.xlu1 %455  ;;  %v452_v7 = vsub.f32 %v440_v2, %v451_v3  ;;  %vm615_vm0 = vcmp.lt.s32.totalorder %v612_v62, 12 }
 0x117   : > { %v462_v5 = vsub.f32 %v456_v4, %v846_v63  ;;  %v1373_v63 = vand.u32 127, %v609_v49 }
 0x119   : > { %v463_v8 = vand.u32 2147483647, %v462_v5  ;;  %vm616_vm1 = vcmp.lt.s32.totalorder %v1373_v63, 40 }
 0x11a   : > { %vm617_vm2 = vmand %vm615_vm0, %vm616_vm1 }
 0x11b   : > { %v464_v10 = vsub.f32 %v452_v7, %v463_v8  ;;  %v480_v12 = vpop.permute.xlu1 %479 }
 0x11c   : > { %v486_v13 = vsub.f32 %v480_v12, %v848_v9 }
 0x11d   : > { %v476_v17 = vsub.f32 %v464_v10, %v475_v11 }
 0x11e   : > { %v487_v18 = vand.u32 2147483647, %v486_v13 }
 0x120   : > { %v492_v19 = vpop.permute.xlu1 %491  ;;  %v488_v22 = vsub.f32 %v476_v17, %v487_v18 }
 0x121   : > { %v498_v20 = vsub.f32 %v492_v19, %v849_v14  ;;  %v627_v14 = vld [vmem:[#allocation3] sm:$0x1] }
 0x123   : > { %v499_v23 = vand.u32 2147483647, %v498_v20 }
 0x125   : > { %v500_v25 = vsub.f32 %v488_v22, %v499_v23  ;;  %v516_v27 = vpop.permute.xlu1 %515 }
 0x126   : > { %v522_v28 = vsub.f32 %v516_v27, %v851_v24 }
 0x127   : > { %v512_v32 = vsub.f32 %v500_v25, %v511_v26 }
 0x128   : > { %v523_v33 = vand.u32 2147483647, %v522_v28 }
 0x12a   : > { %v528_v34 = vpop.permute.xlu1 %527  ;;  %v524_v37 = vsub.f32 %v512_v32, %v523_v33 }
 0x12b   : > { %v534_v35 = vsub.f32 %v528_v34, %v852_v29  ;;  %v629_v29 = vld [vmem:[#allocation4] sm:$0x1] }
 0x12d   : > { %v535_v38 = vand.u32 2147483647, %v534_v35 }
 0x12f   : > { %v536_v40 = vsub.f32 %v524_v37, %v535_v38  ;;  %v552_v42 = vpop.permute.xlu1 %551 }
 0x130   : > { %v558_v43 = vsub.f32 %v552_v42, %v854_v39 }
 0x131   : > { %v548_v47 = vsub.f32 %v536_v40, %v547_v41 }
 0x132   : > { %v559_v48 = vand.u32 2147483647, %v558_v43 }
 0x134   : > { %v564_v50 = vpop.permute.xlu1 %563  ;;  %v560_v53 = vsub.f32 %v548_v47, %v559_v48 }
 0x135   : > { %v570_v51 = vsub.f32 %v564_v50, %v855_v44 }
 0x137   : > { %v571_v54 = vand.u32 2147483647, %v570_v51 }
 0x139   : > { %v572_v58 = vsub.f32 %v560_v53, %v571_v54  ;;  %v588_v60 = vpop.permute.xlu1 %587 }
 0x13a   : > { %v594_v61 = vsub.f32 %v588_v60, %v857_v55  ;;  %v702_v60 = vadd.s32 (!%p859_p9), 8, %v1368_v56 }
 0x13b   : > { %v584_v1 = vsub.f32 %v572_v58, %v583_v59 }
 0x13c   : > { %v595_v2 = vand.u32 2147483647, %v594_v61  ;;  %vm704_vm3 = vcmp.lt.s32.totalorder (!%p859_p9), %v702_v60, 12 }
 0x13d   : > { %vm706_vm4 = vmand (!%p859_p9), %vm704_vm3, %vm616_vm1 }
 0x13e   : > { %v600_v3 = vpop.permute.xlu1 %599  ;;  %v596_v5 = vsub.f32 %v584_v1, %v595_v2 }
 0x13f   : > { %v606_v4 = vsub.f32 %v600_v3, %v858_v0 }
 0x141   : > { %v607_v6 = vand.u32 2147483647, %v606_v4 }
 0x143   : > { %v608_v7 = vsub.f32 %v596_v5, %v607_v6 }
 0x145   : > { %v618_v8 = vsel %vm617_vm2, %v608_v7, -1e+30 }
 0x146   : > { %620 = vst [vmem:[%s619_s20] sm:$0xff] %v618_v8  ;;  %v621_v9 = vrot.slane %v618_v8, 4 }
 0x148   : > { %v622_v10 = vmax.f32 %v618_v8, %v621_v9 }
 0x14a   : > { %v623_v11 = vrot.slane %v622_v10, 2 }
 0x14c   : > { %v624_v12 = vmax.f32 %v622_v10, %v623_v11 }
 0x14d   : > { %v656_v34 = vld [vmem:[#allocation2] sm:$0xff] (!%p859_p9)  ;;  %v657_v35 = vld [vmem:[#allocation2 + $0x8] sm:$0xff] (!%p859_p9) }
 0x14e   : > { %v625_v13 = vrot.slane %v624_v12, 1  ;;  %658 = vmax.xlane.f32.xlu0 (!%p859_p9), %v656_v34 }
 0x150   : > { %v626_v16 = vmax.f32 %v624_v12, %v625_v13 }
 0x152   : > { %v628_v17 = vmax.f32 %v627_v14, %v626_v16  ;;  %660 = vmax.xlane.f32.xlu0 (!%p859_p9), %v657_v35 }
 0x154   : > { %v638_v18 = vrot.slane %v628_v17, %v637_v15  ;;  %651 = vst [vmem:[#allocation3] sm:$0x1] %v628_v17  ;;  %v630_v21 = vsub.f32 %v627_v14, %v628_v17 }
 0x156   : > { %v640_v19 = vsub.f32 %v618_v8, %v638_v18  ;;  %v631_v22 = vmul.f32 1.442695, %v630_v21 }
 0x158   : > { %v641_v20 = vmul.f32 1.442695, %v640_v19 }
 0x15a   : > { %997 = vpow2.f32 %v641_v20 }
 0x15b   : > { %999 = vpow2.f32 %v631_v22  ;;  %v860_v44 = vld [vmem:[#allocation3] ss:$0 sm:$0xff] (!%p859_p9) }
 0x15c   : > { %v685_v45 = vsub.f32 (!%p859_p9), %v656_v34, %v860_v44  ;;  %v686_v47 = vsub.f32 (!%p859_p9), %v657_v35, %v860_v44 }
 0x15e   : > { %v687_v48 = vmul.f32 (!%p859_p9), 1.442695, %v685_v45  ;;  %v689_v49 = vmul.f32 (!%p859_p9), 1.442695, %v686_v47 }
 0x164   : > { %v998_v23 = vpop.eup %997 }
 0x165   : > { %v643_v24 = vrot.slane %v998_v23, 4  ;;  %v1000_v28 = vpop.eup %999 }
 0x166   : > { %v633_v31 = vmul.f32 %v1000_v28, %v629_v29  ;;  %v744_v29 = vld [vmem:[%s1432_s3] sm:$0x1] (!%p859_p9) }
 0x167   : > { %v644_v25 = vadd.f32 %v998_v23, %v643_v24 }
 0x169   : > { %v645_v26 = vrot.slane %v644_v25, 2 }
 0x16b   : > { %v646_v27 = vadd.f32 %v645_v26, %v644_v25 }
 0x16d   : > { %v647_v30 = vrot.slane %v646_v27, 1  ;;  %655 = sbr.rel (%p859_p9) target bundleno = 934 (0x3a6), region = 52 }
 0x16f   : > { %v648_v32 = vadd.f32 %v647_v30, %v646_v27  ;;  %v741_v27 = vld [vmem:[%s1431_s2] sm:$0x1] (!%p859_p9) }
 0x171   : > { %v649_v33 = vadd.f32 %v648_v32, %v633_v31 }
 0x173   : > { %650 = vst [vmem:[#allocation4] sm:$0x1] %v649_v33 }
 0x17a   : > { %v691_v46 = vld [vmem:[#allocation4] sm:$0x1] }
 0x1db   : > { %v659_v36 = vpop.xlane.xlu0 %658 }
 0x1dc   : > { %v662_v37 = vsub.f32 %v656_v34, %v659_v36 }
 0x1de   : > { %v664_v38 = vmul.f32 1.442695, %v662_v37 }
 0x1df   : > { %v661_v39 = vpop.xlane.xlu0 %660 }
 0x1e0   : > { %1001 = vpow2.f32 %v664_v38  ;;  %v663_v40 = vsub.f32 %v657_v35, %v661_v39 }
 0x1e2   : > { %v666_v41 = vmul.f32 1.442695, %v663_v40 }
 0x1e4   : > { %1003 = vpow2.f32 %v666_v41 }
 0x1e5   : > { %1005 = vrcp.f32 %v691_v46 }
 0x1e6   : > { %1007 = vpow2.f32 %v687_v48 }
 0x1e7   : > { %1009 = vpow2.f32 %v689_v49 }
 0x1ea   : > { %v1002_v42 = vpop.eup %1001 }
 0x1eb   : > { %668 = vadd.xlane.f32.xlu1 %v1002_v42 }
 0x1ee   : > { %v1004_v43 = vpop.eup %1003 }
 0x1ef   : > { %670 = vadd.xlane.f32.xlu1 %v1004_v43  ;;  %v1006_v51 = vpop.eup %1005 }
 0x1f0   : > { %v698_v53 = vrot.slane %v1006_v51, %v637_v15  ;;  %v1008_v54 = vpop.eup %1007 }
 0x1f1   : > { %v1010_v55 = vpop.eup %1009 }
 0x1f2   : > { %v700_v57 = vmul.f32 %v1008_v54, %v698_v53  ;;  %v701_v61 = vmul.f32 %v1010_v55, %v698_v53 }
 0x278   : > { %v669_v50 = vpop.xlane.xlu1 %668 }
 0x279   : > { %1011 = vrcp.f32 %v669_v50 }
 0x27c   : > { %v671_v52 = vpop.xlane.xlu1 %670 }
 0x27d   : > { %1013 = vrcp.f32 %v671_v52 }
 0x283   : > { %v1012_v58 = vpop.eup %1011 }
 0x284   : > { %v676_v59 = vmul.f32 %v1012_v58, %v1002_v42 }
 0x286   : > { %v707_v62 = vadd.f32 %v700_v57, %v676_v59  ;;  %v709_v0 = vmul.f32 %v700_v57, %v676_v59 }
 0x287   : > { %v1014_v1 = vpop.eup %1013 }
 0x288   : > { %v677_v2 = vmul.f32 %v1014_v1, %v1004_v43  ;;  %v711_v3 = vsub.f32 %v707_v62, %v709_v0 }
 0x28a   : > { %v708_v4 = vadd.f32 %v701_v61, %v677_v2  ;;  %v710_v5 = vmul.f32 %v701_v61, %v677_v2  ;;  %v713_v7 = vsel %vm616_vm1, %v711_v3, 0.0 }
 0x28b   : > { %v715_v10 = vmul.f32 %v713_v7, %v656_v34 }
 0x28c   : > { %v712_v6 = vsub.f32 %v708_v4, %v710_v5 }
 0x28e   : > { %v714_v8 = vsel %vm706_vm4, %v712_v6, 0.0 }
 0x28f   : > { %v727_v9 = vadd.f32 %v714_v8, %v713_v7  ;;  %v716_v56 = vmul.f32 %v714_v8, %v657_v35 }
 0x291   : > { %728 = vadd.xlane.f32.xlu1 %v727_v9  ;;  %v717_v11 = vadd.f32 %v716_v56, %v715_v10 }
 0x293   : > { %718 = vadd.xlane.f32.xlu0 %v717_v11 }
 0x31e   : > { %v729_v12 = vpop.xlane.xlu1 %728 }
 0x31f   : > { %v730_v13 = vrot.slane %v729_v12, 4 }
 0x320   : > { %v719_v14 = vpop.xlane.xlu0 %718 }
 0x321   : > { %v731_v15 = vadd.f32 %v730_v13, %v729_v12  ;;  %v720_v16 = vrot.slane %v719_v14, 4 }
 0x323   : > { %v732_v17 = vrot.slane %v731_v15, 2  ;;  %v721_v18 = vadd.f32 %v720_v16, %v719_v14 }
 0x325   : > { %v733_v19 = vadd.f32 %v732_v17, %v731_v15  ;;  %v722_v20 = vrot.slane %v721_v18, 2 }
 0x327   : > { %v723_v21 = vadd.f32 %v722_v20, %v721_v18  ;;  %v734_v22 = vrot.slane %v733_v19, 1 }
 0x329   : > { %v724_v63 = vrot.slane %v723_v21, 1  ;;  %v735_v24 = vadd.f32 %v734_v22, %v733_v19 }
 0x32b   : > { %v725_v23 = vadd.f32 %v724_v63, %v723_v21 }
 0x32d   : > { %865 = vpush %v725_v23 }
 0x32e   : > { %867 = vpush %v735_v24 }
 0x35e   : > { %s866_s5 = spop %865 }
 0x35f   : > { %s868_s23 = spop %867 }
 0x360   : > { %v737_v25 = vstv %s868_s23 }
 0x361   : > { %1015 = vrcp.f32 %v737_v25 }
 0x36b   : > { %v1016_v26 = vpop.eup %1015 }
 0x36c   : > { %869 = vpush %v1016_v26 }
 0x39d   : > { %s870_s24 = spop %869 }
 0x39e   : > { %s740_s26 = smul.f32 %s870_s24, %s866_s5 }
 0x3a0   : > { %v742_v28 = vstv %s740_s26 }
 0x3a1   : > { %v743_v30 = vmul.f32 %v742_v28, %v741_v27 }
 0x3a3   : > { %v745_v31 = vadd.f32 %v744_v29, %v743_v30 }
 0x3a5   : > { %746 = vst [vmem:[#allocation10] sm:$0x1] %v745_v31 }
 0x3a6 PF: > { %p892_p10 = scmp.eq.s32.totalorder %s1228_s19, 1  ;;  %s1183_s8 = smov [#allocation10]  }
 0x3a7   : > { %s754_s9 = sshll.u32 %s1183_s8, 4  ;;  %s755_s9 = int_to_ptr.vmem [resolvable:$true] %s754_s9 }
 0x3a8   : > { %s1075_s10 = scalar_lea.vmem %s755_s9, 16  ;;  %s1081_s11 = scalar_lea.vmem %s755_s9, 32 }
 0x3a9   : > { %p1076_p1 = scmp.ne.s32.totalorder %s755_s9, %s1075_s10  ;;  %p1082_p8 = scmp.lt.s32.totalorder %s755_s9, %s755_s9 }
 0x3aa   : > { %p1083_p12 = scmp.lt.s32.totalorder %s1081_s11, %s1075_s10 }
 0x3ab   : > { %p1077_p4 = pnand %p1076_p1, %p892_p10 }
 0x3ac   : > { %p1084_p0 = por %p1083_p12, %p1082_p8 }
 0x3ad   : > { %p1078_p5 = pneg %p1077_p4 }
 0x3af   : > { %p1085_p2 = pnand %p1084_p0, %p1078_p5 }
 0x3b1   : > { %1088 = shalt.err (!%p1085_p2)
}
 0x3b2   : > { %s1089_s15 = scalar_lea.hbm %s1433_s4, 16 }
 0x3b3   : > { %p1090_p13 = scmp.ne.s32.totalorder %s1433_s4, %s1089_s15  ;;  %p1095_p7 = scmp.lt.u32.totalorder %s1089_s15, %s1433_s4 }
 0x3b5   : > { %p1091_p11 = pnand %p1090_p13, %p892_p10 }
 0x3b7   : > { %p1092_p3 = pneg %p1091_p11 }
 0x3b9   : > { %p1097_p6 = pnand %p1095_p7, %p1092_p3 }
 0x3bb   : > { %1100 = shalt.err (!%p1097_p6)
}
 0x3bc   : > { %878 = dma.vmem_to_hbm [thread:$0]  (%p892_p10), %s755_s9, 16, %s1433_s4, [#allocation7]  }
 0x3bd   : > { %1126 = dma.done.wait (%p892_p10), [#allocation7], 16  }
 0x3be   : > { %1128 = vsyncadd (%p892_p10), [#allocation7], 4294967280 }
 0x3bf PF: > { %p16_p9 = scmp.ge.s32.totalorder %s1254_s25, 4   ;;  %s1446_s15 = smov %s1135_s16 }
 0x3c0   : > { %s1447_s16 = smov %s1139_s17  ;;  %s1448_s17 = smov %s1280_s14 }
 0x3c1   : > { %s1449_s18 = smov %s1254_s25  ;;  %18 = sbr.rel (!%p16_p9) target bundleno = 5 (0x5), region = 86 }
 0x3c8   :  { %767 = vsyncpa [#allocation6], 1 }
 0x3c9   :  { %769 = vsyncpa [#allocation6 + $0x1], 1 }
 0x3ca   :  { %770 = vsyncpa [#allocation9], 1 }
 0x3cb   :  { %771 = vsyncpa [#allocation7], 1 }
 0x3cc   :  { %773 = vsyncpa [#allocation7 + $0x1], 1 }

</bundles_post_ra>
